<compile_context>
chip_gen: v7x
topology: tpu7x:2x2x1
jax: 0.10.0
libtpu: 0.0.40
codegen_flags: <defaults>
</compile_context>

<pallas_src>
import jax
import jax.numpy as jnp
from jax.experimental import pallas as pl
from jax.experimental.pallas import tpu as pltpu


# ----------------------------------------------------------------------------- kernel


def _dc_kernel(b_ref, rec_ref, uk_ref, mask_ref, out_ref):
    # b_ref   : (1,) f32 in SMEM, holds 1/(1+w)
    # rec/uk/out : (1, t_c, t_rows, t_lane) blocks in VMEM
    # mask    : (1, 1, t_rows, t_lane) (channel-invariant) or (1, t_c, t_rows, t_lane)
    b = b_ref[0]
    rec = rec_ref[...].astype(jnp.float32)
    uk = uk_ref[...].astype(jnp.float32)
    m = mask_ref[...].astype(jnp.float32)
    # mask*(rec*w/(1+w) + u_k/(1+w)) + (1-mask)*rec  ==  rec + (mask*b)*(u_k - rec)
    out_ref[...] = (rec + (m * b) * (uk - rec)).astype(out_ref.dtype)


# ----------------------------------------------------------------------------- tiling


_BLOCK_BUDGET_ELEMS = (3 * 1024 * 1024) // 4  # ~3 MiB f32 VMEM footprint / operand block


def _round_up(x, m):
    return -(-x // m) * m


def _largest_divisor_leq(n, cap):
    cap = max(1, min(cap, n))
    for d in range(cap, 0, -1):
        if n % d == 0:
            return d
    return 1


def _pick_plane_layout(p):
    """Factor the H*W plane as (rows, lane) with lane a multiple of 128 if possible."""
    for lane in (1024, 512, 256, 128):
        if p % lane == 0 and p // lane >= 8:
            return p // lane, lane
    for lane in (512, 256, 128):
        if p % lane == 0:
            return p // lane, lane
    return 1, p  # awkward plane sizes: single row, lane dim tiled below


def _choose_tiles(c, r, l):
    """Pick the block (1, t_c, t_rows, t_lane); budget counts sublane/lane padding."""
    if l % 128 == 0 or l <= 128:
        t_lane = l
    else:
        # Awkward plane width: tile the lane dim in 128-multiples (ragged tail ok).
        t_lane = min(l, max(128, (_BLOCK_BUDGET_ELEMS // 8) // 128 * 128))

    foot_plane = _round_up(r, 8) * _round_up(t_lane, 128)
    if t_lane == l and foot_plane <= _BLOCK_BUDGET_ELEMS:
        # Whole plane(s) per block; cover as many channels as the budget allows.
        t_rows = r
        t_c = _largest_divisor_leq(c, _BLOCK_BUDGET_ELEMS // foot_plane)
    else:
        # Plane larger than the budget: one channel per block, tile the rows.
        t_c = 1
        if r > 32:
            t_rows = min(r, max(32, (_BLOCK_BUDGET_ELEMS // _round_up(t_lane, 128)) // 32 * 32))
        else:
            t_rows = r
    return t_c, t_rows, t_lane


def _ensure_multi_step(b, c, r, l, t_c, t_rows, t_lane):
    """Never let the grid collapse to a single step (keeps both v7x cores busy)."""
    steps = b * pl.cdiv(c, t_c) * pl.cdiv(r, t_rows) * pl.cdiv(l, t_lane)
    if steps > 1:
        return t_c, t_rows, t_lane
    if c >= 2:
        t_c = _largest_divisor_leq(c, max(1, c // 2))
    elif r >= 64:
        t_rows = max(32, _round_up(-(-r // 2), 32))  # 32-aligned half
        if t_rows >= r:
            t_rows = r
    elif l >= 256:
        t_lane = max(128, (l // 2) // 128 * 128)
    return t_c, t_rows, t_lane


# ----------------------------------------------------------------------------- wrapper


def dc_forward(rec, u_k, mask, w):
    """Pallas implementation of DC.forward(rec, u_k, mask, is_img=False).

    rec, u_k : (B, C, H, W) float arrays (kept in native dtype; cast in-kernel)
    mask     : NHWC-layout mask broadcastable against rec.permute(0,2,3,1):
               (B,H,W,C), (B,H,W,1), (1,H,W,C) or (1,H,W,1)
    w        : scalar learnable parameter
    returns  : (B, C, H, W) in rec.dtype
    """
    B, C, H, W = rec.shape
    assert u_k.shape == rec.shape
    P = H * W

    m = mask
    assert m.ndim == 4, "mask must be NHWC-layout (B|1, H, W, C|1)"
    mB, mH, mW, mC = m.shape
    assert (mH, mW) == (H, W) and mB in (1, B) and mC in (1, C)

    R, L = _pick_plane_layout(P)
    t_c, t_rows, t_lane = _choose_tiles(C, R, L)
    t_c, t_rows, t_lane = _ensure_multi_step(B, C, R, L, t_c, t_rows, t_lane)
    n_r, n_l, n_c = pl.cdiv(R, t_rows), pl.cdiv(L, t_lane), pl.cdiv(C, t_c)
    # Channel index innermost: a channel-invariant mask block keeps the same
    # block index across consecutive steps, so the pipeline skips re-fetching it.
    grid = (B, n_r, n_l, n_c)

    # Zero-copy (contiguous) views of rec / u_k as (B, C, R, L) slabs.
    rec_s = rec.reshape(B, C, R, L)
    uk_s = u_k.reshape(B, C, R, L)

    data_block = (1, t_c, t_rows, t_lane)
    data_map = lambda b, r, l, c: (b, c, r, l)

    if mC == 1:
        # Channel-invariant mask: native NHWC (mB,H,W,1) -> (mB,1,R,L) is a
        # contiguous reshape.  No transpose pass, no broadcast materialization:
        # the channel broadcast lives entirely in the index_map + in-kernel
        # jnp broadcasting of the (1,1,t_rows,t_lane) block.
        mask_s = m.reshape(mB, 1, R, L)
        mask_block = (1, 1, t_rows, t_lane)
        if mB == B:
            mask_map = lambda b, r, l, c: (b, 0, r, l)
        else:
            mask_map = lambda b, r, l, c: (0, 0, r, l)
    else:
        # Per-channel mask: one layout pass over the mask only (rec/u_k/out stay
        # NCHW).  Hoist this transpose to the caller if the same mask feeds a
        # cascade of DC layers.
        mask_s = jnp.transpose(m, (0, 3, 1, 2)).reshape(mB, C, R, L)
        mask_block = (1, t_c, t_rows, t_lane)
        if mB == B:
            mask_map = lambda b, r, l, c: (b, c, r, l)
        else:
            mask_map = lambda b, r, l, c: (0, c, r, l)

    # b = 1/(1+w) computed once here; the kernel never divides.
    b_arr = (1.0 / (1.0 + jnp.asarray(w, jnp.float32))).astype(jnp.float32).reshape(1)

    total = B * C * P
    bytes_accessed = (rec_s.size * rec_s.dtype.itemsize
                      + uk_s.size * uk_s.dtype.itemsize
                      + mask_s.size * mask_s.dtype.itemsize
                      + total * rec.dtype.itemsize)
    cost = pl.CostEstimate(flops=4 * total, transcendentals=0,
                           bytes_accessed=bytes_accessed)

    out_s = pl.pallas_call(
        _dc_kernel,
        out_shape=jax.ShapeDtypeStruct((B, C, R, L), rec.dtype),
        grid=grid,
        in_specs=[
            pl.BlockSpec(memory_space=pltpu.SMEM),   # b = 1/(1+w)
            pl.BlockSpec(data_block, data_map),      # rec
            pl.BlockSpec(data_block, data_map),      # u_k
            pl.BlockSpec(mask_block, mask_map),      # mask
        ],
        out_specs=pl.BlockSpec(data_block, data_map),
        compiler_params=pltpu.CompilerParams(
            dimension_semantics=("parallel", "parallel", "parallel", "arbitrary"),
            vmem_limit_bytes=48 * 1024 * 1024),
        cost_estimate=cost,
    )(b_arr, rec_s, uk_s, mask_s)

    return out_s.reshape(B, C, H, W)


# ----------------------------------------------------------------------------- reference


def dc_reference(rec, u_k, mask, w):
    """Pure-JAX reference mirroring the PyTorch forward exactly."""
    rec_nhwc = jnp.transpose(rec, (0, 2, 3, 1))
    uk_nhwc = jnp.transpose(u_k, (0, 2, 3, 1))
    result = mask * (rec_nhwc * w / (1.0 + w) + uk_nhwc * (1.0 / (w + 1.0)))
    result = result + (1.0 - mask) * rec_nhwc
    return jnp.transpose(result, (0, 3, 1, 2))


if __name__ == "__main__":
    key = jax.random.PRNGKey(0)
    k1, k2, k3, k4 = jax.random.split(key, 4)

    B, C, H, W = 2, 4, 16, 16
    rec = jax.random.normal(k1, (B, C, H, W), dtype=jnp.float32)
    u_k = jax.random.normal(k2, (B, C, H, W), dtype=jnp.float32)
    w = jnp.float32(0.1)  # nn.Parameter(torch.tensor(0.1)) — deterministic init

    dc = jax.jit(dc_forward)

    # (a) common case: channel-invariant undersampling mask, NHWC (B, H, W, 1)
    mask_ci = (jax.random.uniform(k3, (B, H, W, 1)) > 0.5).astype(jnp.float32)
    out_ci = jax.block_until_ready(dc(rec, u_k, mask_ci, w))
    ref_ci = dc_reference(rec, u_k, mask_ci, w)
    assert out_ci.shape == (B, C, H, W)
    assert jnp.allclose(out_ci, ref_ci, atol=1e-5, rtol=1e-5), float(
        jnp.max(jnp.abs(out_ci - ref_ci)))

    # (b) fully general per-channel mask, NHWC (B, H, W, C)
    mask_pc = (jax.random.uniform(k4, (B, H, W, C)) > 0.5).astype(jnp.float32)
    out_pc = jax.block_until_ready(dc(rec, u_k, mask_pc, w))
    ref_pc = dc_reference(rec, u_k, mask_pc, w)
    assert out_pc.shape == (B, C, H, W)
    assert jnp.allclose(out_pc, ref_pc, atol=1e-5, rtol=1e-5), float(
        jnp.max(jnp.abs(out_pc - ref_pc)))

    print("KERNEL_OK")
</pallas_src>

<mosaic_0001>
module attributes {stable_mosaic.version = 11 : i64} {
  func.func @_dc_kernel(%arg0: i32, %arg1: i32, %arg2: i32, %arg3: i32, %arg4: memref<1xf32, #tpu.memory_space<smem>>, %arg5: memref<1x4x1x256xf32, #tpu.memory_space<vmem>>, %arg6: memref<1x4x1x256xf32, #tpu.memory_space<vmem>>, %arg7: memref<1x1x1x256xf32, #tpu.memory_space<vmem>>, %arg8: memref<1x4x1x256xf32, #tpu.memory_space<vmem>>) attributes {dimension_semantics = [#tpu.dimension_semantics<parallel>, #tpu.dimension_semantics<parallel>, #tpu.dimension_semantics<parallel>, #tpu.dimension_semantics<arbitrary>], iteration_bounds = array<i64: 2, 1, 1, 1>, scalar_prefetch = 0 : i64, scratch_operands = 0 : i64, tpu.core_type = #tpu.core_type<tc>, window_params = [{transform_indices = @transform_0, window_bounds = array<i64: 1>}, {transform_indices = @transform_1, window_bounds = array<i64: 1, 4, 1, 256>}, {transform_indices = @transform_2, window_bounds = array<i64: 1, 4, 1, 256>}, {transform_indices = @transform_3, window_bounds = array<i64: 1, 1, 1, 256>}, {transform_indices = @transform_4, window_bounds = array<i64: 1, 4, 1, 256>}]} {
    %c0 = arith.constant 0 : index
    %0 = memref.load %arg4[%c0] : memref<1xf32, #tpu.memory_space<smem>>
    %c0_0 = arith.constant 0 : index
    %c0_1 = arith.constant 0 : index
    %c0_2 = arith.constant 0 : index
    %c0_3 = arith.constant 0 : index
    %1 = vector.load %arg5[%c0_0, %c0_1, %c0_2, %c0_3] : memref<1x4x1x256xf32, #tpu.memory_space<vmem>>, vector<1x4x1x256xf32>
    %c0_4 = arith.constant 0 : index
    %c0_5 = arith.constant 0 : index
    %c0_6 = arith.constant 0 : index
    %c0_7 = arith.constant 0 : index
    %2 = vector.load %arg6[%c0_4, %c0_5, %c0_6, %c0_7] : memref<1x4x1x256xf32, #tpu.memory_space<vmem>>, vector<1x4x1x256xf32>
    %c0_8 = arith.constant 0 : index
    %c0_9 = arith.constant 0 : index
    %c0_10 = arith.constant 0 : index
    %c0_11 = arith.constant 0 : index
    %3 = vector.load %arg7[%c0_8, %c0_9, %c0_10, %c0_11] : memref<1x1x1x256xf32, #tpu.memory_space<vmem>>, vector<1x1x1x256xf32>
    %4 = vector.broadcast %0 : f32 to vector<1x1x1x256xf32>
    %5 = arith.mulf %3, %4 : vector<1x1x1x256xf32>
    %6 = arith.subf %2, %1 : vector<1x4x1x256xf32>
    %7 = vector.broadcast %5 : vector<1x1x1x256xf32> to vector<1x4x1x256xf32>
    %8 = arith.mulf %7, %6 : vector<1x4x1x256xf32>
    %9 = arith.addf %1, %8 : vector<1x4x1x256xf32>
    %c0_12 = arith.constant 0 : index
    %c0_13 = arith.constant 0 : index
    %c0_14 = arith.constant 0 : index
    %c0_15 = arith.constant 0 : index
    %10 = vector.load %arg8[%c0_12, %c0_13, %c0_14, %c0_15] : memref<1x4x1x256xf32, #tpu.memory_space<vmem>>, vector<1x4x1x256xf32>
    tpu.vector_store %arg8[%c0_12, %c0_13, %c0_14, %c0_15], %9 {strides = array<i32>} : memref<1x4x1x256xf32, #tpu.memory_space<vmem>>, vector<1x4x1x256xf32>,
    return
  }
  func.func @transform_0(%arg0: i32, %arg1: i32, %arg2: i32, %arg3: i32) -> i32 {
    %c0_i32 = arith.constant 0 : i32
    %c0_i32_0 = arith.constant 0 : i32
    return %c0_i32 : i32
  }
  func.func @transform_1(%arg0: i32, %arg1: i32, %arg2: i32, %arg3: i32) -> (i32, i32, i32, i32) {
    %c0_i32 = arith.constant 0 : i32
    return %arg0, %arg3, %arg1, %arg2 : i32, i32, i32, i32
  }
  func.func @transform_2(%arg0: i32, %arg1: i32, %arg2: i32, %arg3: i32) -> (i32, i32, i32, i32) {
    %c0_i32 = arith.constant 0 : i32
    return %arg0, %arg3, %arg1, %arg2 : i32, i32, i32, i32
  }
  func.func @transform_3(%arg0: i32, %arg1: i32, %arg2: i32, %arg3: i32) -> (i32, i32, i32, i32) {
    %c0_i32 = arith.constant 0 : i32
    %c0_i32_0 = arith.constant 0 : i32
    return %arg0, %c0_i32, %arg1, %arg2 : i32, i32, i32, i32
  }
  func.func @transform_4(%arg0: i32, %arg1: i32, %arg2: i32, %arg3: i32) -> (i32, i32, i32, i32) {
    %c0_i32 = arith.constant 0 : i32
    return %arg0, %arg3, %arg1, %arg2 : i32, i32, i32, i32
  }
}

</mosaic_0001>

<bundles_post_ra>
// kernel: dc_forward.1
= control target key start
LH: loop header
LB: loop body
LE: loop exit
PB: predicated region body
PF: predicated region fallthrough
CT: control target
= control target key end

     0   :  { %s714_s17 = smov 0   ;;  %s716_s18 = smov 0   ;;  %s753_s0 = inlined_call_operand.<no memory space> [shape: f32[1], index: 0, kind: input, shape index: {}]   ;;  %s754_s1 = inlined_call_operand.vmem [shape: f32[2,4,1,256], index: 1, kind: input, shape index: {}]   ;;  %s755_s2 = inlined_call_operand.vmem [shape: f32[2,4,1,256], index: 2, kind: input, shape index: {}]   ;;  %s756_s3 = inlined_call_operand.vmem [shape: f32[2,1,1,256], index: 3, kind: input, shape index: {}]   ;;  %s757_s4 = inlined_call_operand.vmem [shape: f32[2,4,1,256], index: 4, kind: output, shape index: {}]  }
   0x1   :  { %9 = sst [smem:[#allocation2]] %s753_s0  ;;  %s718_s19 = smov 0  }
   0x2 LB: > { %s41_s0 = sadd.s32 1, %s680_s18  ;;  %p631_p0 = scmp.ge.s32.totalorder %s684_s19, 1  ;;  %s684_s19 = sphi %s718_s19, %s15_s19   ;;  %s680_s18 = sphi %s716_s18, %s759_s18   ;;  %s676_s17 = sphi %s714_s17, %s758_s17  }
   0x3   : > { %p43_p1 = scmp.ge.s32.totalorder %s41_s0, 2  ;;  %p267_p2 = scmp.lt.s32.totalorder %s684_s19, 3 }
   0x5   : > { %s761_s0 = smov (%p43_p1, %s41_s0), 0  ;;  %p268_p3 = pnand %p631_p0, %p267_p2 }
   0x6   : > { %p348_p4 = scmp.lt.s32.totalorder (!%p268_p3), %s676_s17, 1  ;;  %s416_s20 = sld [smem:[#allocation2]] (!%p268_p3)  ;;  %v440_v6 = vlaneseq (!%p268_p3) }
   0x7   : > { %271 = sbr.rel (%p268_p3) target bundleno = 28 (0x1c), region = 36 }
   0x8   : > { %vm442_vm0 = vcmp.lt.s32.totalorder (!%p268_p3), %v440_v6, 256 }
   0xc   : > { %v426_v2 = vstv (!%p268_p3), %s416_s20 }
   0xe   : > { %s763_s17 = smov (!%p348_p4, %s676_s17), 1 }
   0xf   : > { %s632_s21 = sshll.u32 %s763_s17, 3  ;;  %s634_s22 = sshll.u32 %s763_s17, 1 }
  0x10   : > { %s362_s25 = scalar_lea.vmem %s754_s1, %s632_s21  ;;  %s381_s28 = scalar_lea.vmem %s755_s2, %s632_s21 }
  0x11   : > { %s395_s5 = scalar_lea.vmem %s756_s3, %s634_s22  ;;  %v417_v0 = vld [vmem:[%s362_s25] sm:$0x3]  ;;  %v418_v3 = vld [vmem:[%s362_s25 + $0x2] sm:$0x3]  ;;  %v419_v8 = vld [vmem:[%s362_s25 + $0x4] sm:$0x3]  ;;  %s413_s8 = scalar_lea.vmem %s757_s4, %s632_s21 }
  0x12   : > { %v421_v1 = vld [vmem:[%s381_s28] sm:$0x3]  ;;  %v422_v7 = vld [vmem:[%s381_s28 + $0x2] sm:$0x3]  ;;  %v423_v11 = vld [vmem:[%s381_s28 + $0x4] sm:$0x3] }
  0x13   : > { %v425_v4 = vld [vmem:[%s395_s5] sm:$0x3]  ;;  %v428_v5 = vsub.f32 %v421_v1, %v417_v0  ;;  %v429_v10 = vsub.f32 %v422_v7, %v418_v3  ;;  %v420_v12 = vld [vmem:[%s362_s25 + $0x6] sm:$0x3]  ;;  %v430_v14 = vsub.f32 %v423_v11, %v419_v8 }
  0x14   : > { %v427_v9 = vmul.f32 %v426_v2, %v425_v4  ;;  %v424_v13 = vld [vmem:[%s381_s28 + $0x6] sm:$0x3] }
  0x15   : > { %v431_v15 = vsub.f32 %v424_v13, %v420_v12 }
  0x16   : > { %v432_v16 = vmul.f32 %v428_v5, %v427_v9  ;;  %v433_v17 = vmul.f32 %v429_v10, %v427_v9  ;;  %v434_v18 = vmul.f32 %v430_v14, %v427_v9 }
  0x17   : > { %v435_v19 = vmul.f32 %v431_v15, %v427_v9 }
  0x18   : > { %v436_v20 = vadd.f32 %v432_v16, %v417_v0  ;;  %v437_v21 = vadd.f32 %v433_v17, %v418_v3  ;;  %v438_v22 = vadd.f32 %v434_v18, %v419_v8 }
  0x19   : > { %v439_v23 = vadd.f32 %v435_v19, %v420_v12 }
  0x1a   : > { %444 = vst.msk [vmem:[%s413_s8] sm:$0x3] %vm442_vm0, %v436_v20  ;;  %445 = vst.msk [vmem:[%s413_s8 + $0x2] sm:$0x3] %vm442_vm0, %v437_v21 }
  0x1b   : > { %446 = vst.msk [vmem:[%s413_s8 + $0x4] sm:$0x3] %vm442_vm0, %v438_v22  ;;  %447 = vst.msk [vmem:[%s413_s8 + $0x6] sm:$0x3] %vm442_vm0, %v439_v23 }
  0x1c PF: > { %s15_s19 = sadd.s32 1, %s684_s19   ;;  %s758_s17 = smov %s680_s18 }
  0x1d   : > { %p12_p5 = scmp.ge.s32.totalorder %s15_s19, 4   ;;  %s759_s18 = smov %s761_s0 }
  0x1f   :  { %14 = sbr.rel (!%p12_p5) target bundleno = 2 (0x2), region = 72 }

</bundles_post_ra>
